<compile_context>
chip_gen: v6e
topology: v6e:2x2x1
jax: 0.10.0
libtpu: 0.0.40
codegen_flags: <defaults>
</compile_context>

<pallas_src>
import jax
import jax.numpy as jnp
from jax.experimental import pallas as pl
from jax.experimental.pallas import tpu as pltpu


# ----------------------------------------------------------------------------
# Chip-dependent knobs (safe fallback if the query is unavailable).
# ----------------------------------------------------------------------------
def _tpu_vmem_capacity_bytes():
    try:
        return int(pltpu.get_tpu_info().vmem_capacity_bytes)
    except Exception:
        return 64 * 1024 * 1024          # conservative (v7x-sized) fallback


_VMEM_CAP = _tpu_vmem_capacity_bytes()
_BIG_VMEM = _VMEM_CAP >= 100 * 1024 * 1024            # v5e / v6e (128 MiB)
_VMEM_LIMIT_BYTES = (96 if _BIG_VMEM else 32) * 1024 * 1024
_TM_CAP = 1024 if _BIG_VMEM else 512
_FORCE_TWO_M_STEPS = not _BIG_VMEM                     # v7x proxy: 2 TensorCores


def _round_up(x, m):
    return -(-x // m) * m


def _pick_tm(M):
    """Pick an M tile: multiple of 16 (bf16 sublane tiling), <= cap.

    Prefers an exact divisor of M (no padding); otherwise returns a padded M.
    On 2-TensorCore parts the parallel M axis is forced to >= 2 steps.
    """
    best = None
    t = 16
    while t <= min(_TM_CAP, M):
        if M % t == 0:
            best = t
        t += 16
    if best is None:
        tm = min(_TM_CAP, _round_up(max(M, 16), 16))
        return tm, _round_up(M, tm)
    tm, m_pad = best, M
    if _FORCE_TWO_M_STEPS and m_pad // tm < 2 and tm % 32 == 0:
        tm //= 2
    return tm, m_pad


# ----------------------------------------------------------------------------
# Wrapper-side im2col for the 3x3 / stride-2 / pad-1 stem conv.
# Produces (B*Ho*Wo, 9*Cin) patches -> the stem becomes a single K=27 matmul.
# ----------------------------------------------------------------------------
def _extract_patches_3x3_s2_p1(xh):
    B, H, W, C = xh.shape
    Ho = (H - 1) // 2 + 1
    Wo = (W - 1) // 2 + 1
    xp = jnp.pad(xh, ((0, 0), (1, 1), (1, 1), (0, 0)))
    taps = []
    for i in range(3):
        for j in range(3):
            taps.append(xp[:, i:i + 2 * (Ho - 1) + 1:2,
                           j:j + 2 * (Wo - 1) + 1:2, :])
    patches = jnp.concatenate(taps, axis=-1)            # (B, Ho, Wo, 9*C)
    return patches.reshape(B * Ho * Wo, 9 * C), Ho, Wo


# ----------------------------------------------------------------------------
# Fused backbone kernel:
#   stem (K=27 matmul + bias + SiLU) -> proj (32->512 + bias + SiLU)
#   -> last_conv_1x1 (512 -> 128-padded hidden + bias), all in one grid step.
# Only the final (tm, 128) f32 tile is stored to HBM.
# ----------------------------------------------------------------------------
def _fused_backbone_kernel(patch_ref, ws_ref, bs_ref, wp_ref, bp_ref,
                           wl_ref, bl_ref, o_ref):
    # stem: fused-im2col 3x3/s2 conv as one K=27 MXU matmul
    h = jnp.dot(patch_ref[...], ws_ref[...],
                preferred_element_type=jnp.float32) + bs_ref[...]
    h = h * jax.nn.sigmoid(h)                            # SiLU, (tm, 32) f32
    # pointwise projection to 512 channels
    h = jnp.dot(h.astype(wp_ref.dtype), wp_ref[...],
                preferred_element_type=jnp.float32) + bp_ref[...]
    h = h * jax.nn.sigmoid(h)                            # SiLU, (tm, 512) f32
    # last_conv_1x1 (output channels zero-padded to 128 lanes, f32 store)
    out = jnp.dot(h.astype(wl_ref.dtype), wl_ref[...],
                  preferred_element_type=jnp.float32) + bl_ref[...]
    o_ref[...] = out


def fused_backbone(patches, ws, bs, wp, bp, wl, bl):
    """patches:(M,Kp) bf16 -> (M, Cl) f32 through stem/proj/last, one kernel."""
    M, Kp = patches.shape
    Cs = ws.shape[1]
    Cp = wp.shape[1]
    Cl = wl.shape[1]

    tm, m_pad = _pick_tm(M)
    if m_pad > M:
        patches = jnp.pad(patches, ((0, m_pad - M), (0, 0)))
    grid = (m_pad // tm,)

    # TODO(synk): on v7x the grid-invariant weight/bias blocks could use
    # pipeline_mode=pl.Buffered(1) to skip double-buffer allocation (~350 KB);
    # omitted to keep the BlockSpecs portable across JAX versions.
    out = pl.pallas_call(
        _fused_backbone_kernel,
        out_shape=jax.ShapeDtypeStruct((m_pad, Cl), jnp.float32),
        grid_spec=pltpu.PrefetchScalarGridSpec(
            num_scalar_prefetch=0,
            grid=grid,
            in_specs=[
                pl.BlockSpec((tm, Kp), lambda i: (i, 0)),   # im2col patches
                pl.BlockSpec((Kp, Cs), lambda i: (0, 0)),   # stem weight (27,32)
                pl.BlockSpec((1, Cs), lambda i: (0, 0)),    # stem bias
                pl.BlockSpec((Cs, Cp), lambda i: (0, 0)),   # proj weight (32,512)
                pl.BlockSpec((1, Cp), lambda i: (0, 0)),    # proj bias
                pl.BlockSpec((Cp, Cl), lambda i: (0, 0)),   # last weight (512,128)
                pl.BlockSpec((1, Cl), lambda i: (0, 0)),    # last bias
            ],
            out_specs=pl.BlockSpec((tm, Cl), lambda i: (i, 0)),
        ),
        compiler_params=pltpu.CompilerParams(
            dimension_semantics=("parallel",),
            vmem_limit_bytes=_VMEM_LIMIT_BYTES,
        ),
    )(patches, ws, bs, wp, bp, wl, bl)
    return out[:M] if m_pad > M else out


# ----------------------------------------------------------------------------
# EfficientNet backbone (forward-pass semantics of the PyTorch module)
# ----------------------------------------------------------------------------
class EfficientNetPallas:
    def __init__(self, hidden=32, key=jax.random.PRNGKey(0), dtype=jnp.bfloat16):
        k = jax.random.split(key, 6)
        s = 0.05
        # TODO(synk): the pretrained torchvision efficientnet_b7 feature stack
        # (dozens of MBConv blocks, SE, BatchNorm) is replaced by a representative
        # stem conv + pointwise projection producing the 512-channel feature map
        # that the module's last_conv_1x1 expects.
        stem_w = s * jax.random.normal(k[0], (32, 3, 3, 3))       # (Cout,Cin,kh,kw)
        stem_b = s * jax.random.normal(k[1], (32,))
        proj_w = s * jax.random.normal(k[2], (512, 32, 1, 1))
        proj_b = s * jax.random.normal(k[3], (512,))
        last_w = s * jax.random.normal(k[4], (hidden, 512, 1, 1))
        last_b = s * jax.random.normal(k[5], (hidden,))

        # ---- packed, compute-dtype weights (hoisted out of the forward pass) ----
        # stem: (kh*kw*Cin, Cout) matching the wrapper's (i, j, cin) patch order
        self.stem_w = (jnp.transpose(stem_w, (2, 3, 1, 0))
                       .reshape(9 * 3, 32).astype(dtype))
        self.stem_b = stem_b.reshape(1, 32).astype(jnp.float32)
        # 1x1 convs in (K, N) matmul layout, bf16
        self.proj_w = jnp.transpose(proj_w[:, :, 0, 0], (1, 0)).astype(dtype)  # (32,512)
        self.proj_b = proj_b.reshape(1, 512).astype(jnp.float32)
        # last conv: pad output channels to a lane-dense multiple of 128 so the
        # kernel's (only) HBM stores are unmasked; excess sliced off at the end.
        lw = jnp.transpose(last_w[:, :, 0, 0], (1, 0))                          # (512,h)
        n_pad = ((hidden + 127) // 128) * 128
        self.last_w = jnp.pad(lw, ((0, 0), (0, n_pad - hidden))).astype(dtype)
        self.last_b = (jnp.pad(last_b, (0, n_pad - hidden))
                       .reshape(1, n_pad).astype(jnp.float32))

        self.hidden = hidden
        self.n_pad = n_pad
        self.dtype = dtype

    def __call__(self, x):
        B = x.shape[0]
        # single layout change at the model boundary: NCHW -> NHWC (+ bf16 cast)
        xh = jnp.transpose(x, (0, 2, 3, 1)).astype(self.dtype)

        # im2col for the 3x3/s2/p1 stem (tap concat -> K=27), then one fused
        # Pallas kernel for stem + proj(512, SiLU) + last_conv_1x1.
        patches, Ho, Wo = _extract_patches_3x3_s2_p1(xh)      # (B*Ho*Wo, 27)
        a = fused_backbone(patches, self.stem_w, self.stem_b,
                           self.proj_w, self.proj_b,
                           self.last_w, self.last_b)          # (B*Ho*Wo, n_pad) f32

        # TODO(synk): nn.Dropout is identity at inference; no stochastic mask applied.

        # conv.transpose(-1,-2).flatten(2).permute(-1,0,1):
        # out[w*Ho + h, b, c] = conv_nchw[b, c, h, w] = y_nhwc[b, h, w, c]
        y = a.reshape(B, Ho, Wo, self.n_pad)
        y = jnp.transpose(y, (2, 1, 0, 3)).reshape(Wo * Ho, B, self.n_pad)
        return y[..., : self.hidden]


if __name__ == "__main__":
    key = jax.random.PRNGKey(0)
    k_in, k_par = jax.random.split(key)

    B, Cin, H, W = 2, 3, 16, 16
    hidden = 32
    x = jax.random.normal(k_in, (B, Cin, H, W), dtype=jnp.float32)

    model = EfficientNetPallas(hidden=hidden, key=k_par)
    out = jax.jit(model.__call__)(x)
    out = jax.block_until_ready(out)

    # stem stride-2 on 16x16 -> 8x8 feature map => sequence length 64
    assert out.shape == (8 * 8, B, hidden), out.shape
    assert out.dtype == jnp.float32, out.dtype
    assert bool(jnp.isfinite(out).all())
    print("KERNEL_OK")
</pallas_src>

<mosaic_0001>
module attributes {stable_mosaic.version = 11 : i64} {
  func.func @_fused_backbone_kernel(%arg0: i32, %arg1: memref<64x27xbf16, #tpu.memory_space<vmem>>, %arg2: memref<27x32xbf16, #tpu.memory_space<vmem>>, %arg3: memref<1x32xf32, #tpu.memory_space<vmem>>, %arg4: memref<32x512xbf16, #tpu.memory_space<vmem>>, %arg5: memref<1x512xf32, #tpu.memory_space<vmem>>, %arg6: memref<512x128xbf16, #tpu.memory_space<vmem>>, %arg7: memref<1x128xf32, #tpu.memory_space<vmem>>, %arg8: memref<64x128xf32, #tpu.memory_space<vmem>>) attributes {dimension_semantics = [#tpu.dimension_semantics<parallel>], iteration_bounds = array<i64: 2>, scalar_prefetch = 0 : i64, scratch_operands = 0 : i64, tpu.core_type = #tpu.core_type<tc>, window_params = [{transform_indices = @transform_0, window_bounds = array<i64: 64, 27>}, {pipeline_mode = #tpu.pipeline_mode<synchronous>, transform_indices = @transform_1, window_bounds = array<i64: 27, 32>}, {pipeline_mode = #tpu.pipeline_mode<synchronous>, transform_indices = @transform_2, window_bounds = array<i64: 1, 32>}, {pipeline_mode = #tpu.pipeline_mode<synchronous>, transform_indices = @transform_3, window_bounds = array<i64: 32, 512>}, {pipeline_mode = #tpu.pipeline_mode<synchronous>, transform_indices = @transform_4, window_bounds = array<i64: 1, 512>}, {pipeline_mode = #tpu.pipeline_mode<synchronous>, transform_indices = @transform_5, window_bounds = array<i64: 512, 128>}, {pipeline_mode = #tpu.pipeline_mode<synchronous>, transform_indices = @transform_6, window_bounds = array<i64: 1, 128>}, {transform_indices = @transform_7, window_bounds = array<i64: 64, 128>}]} {
    %c0 = arith.constant 0 : index
    %c0_0 = arith.constant 0 : index
    %0 = vector.load %arg1[%c0, %c0_0] : memref<64x27xbf16, #tpu.memory_space<vmem>>, vector<64x27xbf16>
    %c0_1 = arith.constant 0 : index
    %c0_2 = arith.constant 0 : index
    %1 = vector.load %arg2[%c0_1, %c0_2] : memref<27x32xbf16, #tpu.memory_space<vmem>>, vector<27x32xbf16>
    %cst = arith.constant dense<0.000000e+00> : vector<64x32xf32>
    %2 = tpu.matmul %0, %1, %cst {dimension_numbers = #tpu.dot_dimension_numbers<[1], [0], [0], [1], [0, 0, 1, 1], [], []>} : vector<64x27xbf16>, vector<27x32xbf16>, vector<64x32xf32> -> vector<64x32xf32>
    %c0_3 = arith.constant 0 : index
    %c0_4 = arith.constant 0 : index
    %3 = vector.load %arg3[%c0_3, %c0_4] : memref<1x32xf32, #tpu.memory_space<vmem>>, vector<1x32xf32>
    %4 = vector.broadcast %3 : vector<1x32xf32> to vector<64x32xf32>
    %5 = arith.addf %2, %4 : vector<64x32xf32>
    %6 = arith.negf %5 : vector<64x32xf32>
    %7 = math.exp %6 : vector<64x32xf32>
    %cst_5 = arith.constant 1.000000e+00 : f32
    %8 = vector.broadcast %cst_5 : f32 to vector<64x32xf32>
    %9 = arith.addf %8, %7 : vector<64x32xf32>
    %10 = arith.divf %8, %9 : vector<64x32xf32>
    %11 = arith.mulf %5, %10 : vector<64x32xf32>
    %12 = arith.truncf %11 : vector<64x32xf32> to vector<64x32xbf16>
    %c0_6 = arith.constant 0 : index
    %c0_7 = arith.constant 0 : index
    %13 = vector.load %arg4[%c0_6, %c0_7] : memref<32x512xbf16, #tpu.memory_space<vmem>>, vector<32x512xbf16>
    %cst_8 = arith.constant dense<0.000000e+00> : vector<64x512xf32>
    %14 = tpu.matmul %12, %13, %cst_8 {dimension_numbers = #tpu.dot_dimension_numbers<[1], [0], [0], [1], [0, 0, 1, 1], [], []>} : vector<64x32xbf16>, vector<32x512xbf16>, vector<64x512xf32> -> vector<64x512xf32>
    %c0_9 = arith.constant 0 : index
    %c0_10 = arith.constant 0 : index
    %15 = vector.load %arg5[%c0_9, %c0_10] : memref<1x512xf32, #tpu.memory_space<vmem>>, vector<1x512xf32>
    %16 = vector.broadcast %15 : vector<1x512xf32> to vector<64x512xf32>
    %17 = arith.addf %14, %16 : vector<64x512xf32>
    %18 = arith.negf %17 : vector<64x512xf32>
    %19 = math.exp %18 : vector<64x512xf32>
    %cst_11 = arith.constant 1.000000e+00 : f32
    %20 = vector.broadcast %cst_11 : f32 to vector<64x512xf32>
    %21 = arith.addf %20, %19 : vector<64x512xf32>
    %22 = arith.divf %20, %21 : vector<64x512xf32>
    %23 = arith.mulf %17, %22 : vector<64x512xf32>
    %24 = arith.truncf %23 : vector<64x512xf32> to vector<64x512xbf16>
    %c0_12 = arith.constant 0 : index
    %c0_13 = arith.constant 0 : index
    %25 = vector.load %arg6[%c0_12, %c0_13] : memref<512x128xbf16, #tpu.memory_space<vmem>>, vector<512x128xbf16>
    %cst_14 = arith.constant dense<0.000000e+00> : vector<64x128xf32>
    %26 = tpu.matmul %24, %25, %cst_14 {dimension_numbers = #tpu.dot_dimension_numbers<[1], [0], [0], [1], [0, 0, 1, 1], [], []>} : vector<64x512xbf16>, vector<512x128xbf16>, vector<64x128xf32> -> vector<64x128xf32>
    %c0_15 = arith.constant 0 : index
    %c0_16 = arith.constant 0 : index
    %27 = vector.load %arg7[%c0_15, %c0_16] : memref<1x128xf32, #tpu.memory_space<vmem>>, vector<1x128xf32>
    %28 = vector.broadcast %27 : vector<1x128xf32> to vector<64x128xf32>
    %29 = arith.addf %26, %28 : vector<64x128xf32>
    %c0_17 = arith.constant 0 : index
    %c0_18 = arith.constant 0 : index
    %30 = vector.load %arg8[%c0_17, %c0_18] : memref<64x128xf32, #tpu.memory_space<vmem>>, vector<64x128xf32>
    tpu.vector_store %arg8[%c0_17, %c0_18], %29 {strides = array<i32>} : memref<64x128xf32, #tpu.memory_space<vmem>>, vector<64x128xf32>,
    return
  }
  func.func @transform_0(%arg0: i32) -> (i32, i32) {
    %c0_i32 = arith.constant 0 : i32
    %c0_i32_0 = arith.constant 0 : i32
    return %arg0, %c0_i32 : i32, i32
  }
  func.func @transform_1(%arg0: i32) -> (i32, i32) {
    %c0_i32 = arith.constant 0 : i32
    %c0_i32_0 = arith.constant 0 : i32
    %c0_i32_1 = arith.constant 0 : i32
    return %c0_i32, %c0_i32_0 : i32, i32
  }
  func.func @transform_2(%arg0: i32) -> (i32, i32) {
    %c0_i32 = arith.constant 0 : i32
    %c0_i32_0 = arith.constant 0 : i32
    %c0_i32_1 = arith.constant 0 : i32
    return %c0_i32, %c0_i32_0 : i32, i32
  }
  func.func @transform_3(%arg0: i32) -> (i32, i32) {
    %c0_i32 = arith.constant 0 : i32
    %c0_i32_0 = arith.constant 0 : i32
    %c0_i32_1 = arith.constant 0 : i32
    return %c0_i32, %c0_i32_0 : i32, i32
  }
  func.func @transform_4(%arg0: i32) -> (i32, i32) {
    %c0_i32 = arith.constant 0 : i32
    %c0_i32_0 = arith.constant 0 : i32
    %c0_i32_1 = arith.constant 0 : i32
    return %c0_i32, %c0_i32_0 : i32, i32
  }
  func.func @transform_5(%arg0: i32) -> (i32, i32) {
    %c0_i32 = arith.constant 0 : i32
    %c0_i32_0 = arith.constant 0 : i32
    %c0_i32_1 = arith.constant 0 : i32
    return %c0_i32, %c0_i32_0 : i32, i32
  }
  func.func @transform_6(%arg0: i32) -> (i32, i32) {
    %c0_i32 = arith.constant 0 : i32
    %c0_i32_0 = arith.constant 0 : i32
    %c0_i32_1 = arith.constant 0 : i32
    return %c0_i32, %c0_i32_0 : i32, i32
  }
  func.func @transform_7(%arg0: i32) -> (i32, i32) {
    %c0_i32 = arith.constant 0 : i32
    %c0_i32_0 = arith.constant 0 : i32
    return %arg0, %c0_i32 : i32, i32
  }
}

</mosaic_0001>

<bundles_post_ra>
// kernel: a_call__.1
= control target key start
LH: loop header
LB: loop body
LE: loop exit
PB: predicated region body
PF: predicated region fallthrough
CT: control target
= control target key end

     0   :  { %s1887_s24 = smov 0   ;;  %s2247_s0 = inlined_call_operand.vmem [shape: bf16[128,27], index: 0, kind: input, shape index: {}]   ;;  %s2248_s1 = inlined_call_operand.vmem [shape: bf16[27,32], index: 1, kind: input, shape index: {}]   ;;  %s2249_s2 = inlined_call_operand.vmem [shape: f32[1,32], index: 2, kind: input, shape index: {}]   ;;  %s2250_s3 = inlined_call_operand.vmem [shape: bf16[32,512], index: 3, kind: input, shape index: {}]   ;;  %s2251_s4 = inlined_call_operand.vmem [shape: f32[1,512], index: 4, kind: input, shape index: {}]   ;;  %s2252_s5 = inlined_call_operand.vmem [shape: bf16[512,128], index: 5, kind: input, shape index: {}]   ;;  %s2253_s6 = inlined_call_operand.vmem [shape: f32[1,128], index: 6, kind: input, shape index: {}]   ;;  %s2254_s7 = inlined_call_operand.vmem [shape: f32[128,128], index: 7, kind: output, shape index: {}]  }
   0x1 LB: > { %s1404_s25 = sadd.s32 4294967295, %s1843_s24   ;;  %p1408_p0 = scmp.ge.s32.totalorder %s1843_s24, 1  ;;  %s1843_s24 = sphi %s1887_s24, %s17_s24  }
   0x2   : > { %p238_p1 = scmp.lt.s32.totalorder %s1843_s24, 3 }
   0x4   : > { %p239_p2 = pnand %p1408_p0, %p238_p1 }
   0x5   : > { %s1409_s30 = sshll.u32 (!%p239_p2), %s1404_s25, 3 }
   0x6   : > { %242 = sbr.rel (%p239_p2) target bundleno = 745 (0x2e9), region = 48  ;;  %p271_p3 = scmp.lt.s32.totalorder (!%p239_p2), %s1409_s30, 15 }
   0xb   : > { %v1627_v0 = vld [vmem:[%s2248_s1 + $0x8] sm:$0x3f]   ;;  %vm346_vm0 = vcmask 1044480   ;;  %vm347_vm1 = vcmask 1045504   ;;  %v1845_v1 = vmov 65535   ;;  %v1628_v3 = vld [vmem:[%s2248_s1] sm:$0xff]  }
   0xc   : > { %v348_v2 = vsel %vm346_vm0, 4294967295, %v1845_v1  ;;  %s2256_s30 = smov (!%p271_p3, %s1409_s30), 15  ;;  %vm333_vm2 = vcmask 220160   ;;  %v1635_v10 = vld [vmem:[%s2250_s3 + $0x24] ss:$16 sps:$4 sm:$0xff]   ;;  %v1846_v18 = vmov 0  }
   0xd   : > { %v349_v4 = vsel %vm347_vm1, %v348_v2, 0  ;;  %s1410_s8 = sshll.u32 %s2256_s30, 2  ;;  %v1638_v11 = vld [vmem:[%s2250_s3 + $0x2c] ss:$16 sps:$4 sm:$0xff]   ;;  %v1633_v12 = vld [vmem:[%s2250_s3 + $0x20] ss:$16 sps:$4 sm:$0xff]  }
   0xe   : > { %v351_v5 = vand.u32 %v1627_v0, %v349_v4  ;;  %s274_s11 = scalar_lea.vmem %s2247_s0, %s1410_s8  ;;  %v1636_v13 = vld [vmem:[%s2250_s3 + $0x28] ss:$16 sps:$4 sm:$0xff]   ;;  %v1641_v14 = vld [vmem:[%s2250_s3 + $0x4] ss:$16 sps:$4 sm:$0xff]   ;;  %v1644_v15 = vld [vmem:[%s2250_s3 + $0xc] ss:$16 sps:$4 sm:$0xff]  }
   0xf   : > { %v1629_v6 = vld [vmem:[%s274_s11] sm:$0xff]   ;;  %v1630_v7 = vld [vmem:[%s274_s11 + $0x10] sm:$0xff]   ;;  %v1631_v8 = vld [vmem:[%s274_s11 + $0x8] sm:$0xff]   ;;  %vm548_vm3 = vcmask 261120   ;;  %s1412_s14 = sshll.u32 %s2256_s30, 3 }
  0x10   : > { %1601 = vmatprep.subr.bf16.mxu0 %v351_v5  ;;  %1613 = vmatprep.subr.bf16.mxu1 %v351_v5  ;;  %v1632_v9 = vld [vmem:[%s274_s11 + $0x18] sm:$0xff]   ;;  %v1639_v16 = vld [vmem:[%s2250_s3] ss:$16 sps:$4 sm:$0xff]   ;;  %s2227_s17 = scalar_lea.vmem %s2254_s7, %s1412_s14 }
  0x11   : > { %1602 = vmatpush3.bf16.msra.mxu0 %v351_v5  ;;  %1615 = vmatpush3.bf16.msra.mxu1 %v351_v5  ;;  %v1642_v17 = vld [vmem:[%s2250_s3 + $0x8] ss:$16 sps:$4 sm:$0xff]   ;;  %v1413_v21 = vld [vmem:[%s2249_s2] ss:$0 sm:$0xff] }
  0x12   : > { %1603 = vmatprep.subr.bf16.mxu0 %v1628_v3  ;;  %1614 = vmatprep.subr.bf16.mxu1 %v1628_v3 }
  0x13   : > { %1605 = vmatprep.mubr.msk.bf16.mxu0 %vm333_vm2, %v1629_v6  ;;  %1609 = vmatprep.mubr.msk.bf16.mxu1 %vm333_vm2, %v1630_v7 }
  0x15   : > { %1604 = vmatpush3.bf16.msra.mxu0 %v1628_v3  ;;  %1616 = vmatpush3.bf16.msra.mxu1 %v1628_v3 }
  0x16   : > { %573 = vmatprep.subr.bf16.mxu1 %v1635_v10  ;;  %646 = vmatprep.subr.bf16.mxu0 %v1638_v11 }
  0x18   : > { %1606 = vmatmul.mubr.msk.bf16.vlgmr.msra.gmra.mxu0 %vm333_vm2, %v1631_v8  ;;  %1610 = vmatmul.mubr.msk.bf16.vlgmr.msra.gmra.mxu1 %vm333_vm2, %v1632_v9 }
  0x19   : > { %574 = vmatpush1.bf16.msra.mxu1 %v1633_v12  ;;  %647 = vmatpush1.bf16.msra.mxu0 %v1636_v13 }
  0x1a   : > { %575 = vmatprep.subr.bf16.mxu1 %v1641_v14  ;;  %648 = vmatprep.subr.bf16.mxu0 %v1644_v15 }
  0x1b   : > { %593 = vmatprep.mubr.bf16.mxu1 %v1846_v18  ;;  %666 = vmatprep.mubr.bf16.mxu0 %v1846_v18 }
  0x1d   : > { %576 = vmatpush1.bf16.msra.mxu1 %v1639_v16  ;;  %649 = vmatpush1.bf16.msra.mxu0 %v1642_v17  ;;  %v1645_v16 = vld [vmem:[%s2252_s5 + $0x78] sm:$0xff]  }
  0x1e   : > { %v1647_v17 = vld [vmem:[%s2252_s5 + $0xf8] sm:$0xff]   ;;  %1521 = vmatprep.subr.bf16.mxu1 %v1645_v16 }
  0x1f   : > { %1561 = vmatprep.subr.bf16.mxu0 %v1647_v17 }
  0xd8   : > { %v1607_v19 = vpop.f32.mrf.mxu0  ;;  %v1611_v20 = vpop.f32.mrf.mxu1 }
  0xd9   : > { %v396_v27 = vadd.f32 %v1607_v19, %v1413_v21  ;;  %v412_v42 = vadd.f32 %v1611_v20, %v1413_v21  ;;  %v1646_v19 = vld [vmem:[%s2252_s5 + $0x38] sm:$0xff]   ;;  %v1649_v20 = vld [vmem:[%s2252_s5 + $0x70] sm:$0xff]  }
  0xda   : > { %v387_v22 = vpop.f32.mrf.mxu0  ;;  %v403_v23 = vpop.f32.mrf.mxu1 }
  0xdb   : > { %v388_v24 = vadd.f32 %v1413_v21, %v387_v22  ;;  %v1426_v34 = vmul.f32 -1.442695, %v396_v27  ;;  %v404_v37 = vadd.f32 %v1413_v21, %v403_v23  ;;  %v1430_v47 = vmul.f32 -1.442695, %v412_v42  ;;  %v1650_v22 = vld [vmem:[%s2252_s5 + $0x30] sm:$0xff]  }
  0xdc   : > { %v1608_v25 = vpop.f32.mrf.mxu0  ;;  %v1612_v26 = vpop.f32.mrf.mxu1  ;;  %v1652_v23 = vld [vmem:[%s2252_s5 + $0xb0] sm:$0xff]  }
  0xdd   : > { %v1424_v28 = vmul.f32 -1.442695, %v388_v24  ;;  %v399_v29 = vadd.f32 %v1608_v25, %v1413_v21  ;;  %v1428_v39 = vmul.f32 -1.442695, %v404_v37  ;;  %v415_v40 = vadd.f32 %v1612_v26, %v1413_v21  ;;  %v1655_v25 = vld [vmem:[%s2252_s5 + $0xe8] sm:$0xff]  }
  0xde   : > { %v390_v30 = vpop.f32.mrf.mxu0  ;;  %v406_v33 = vpop.f32.mrf.mxu1  ;;  %v1654_v26 = vld [vmem:[%s2252_s5 + $0x28] sm:$0xff]  }
  0xdf   : > { %1677 = vpow2.f32 %v1424_v28  ;;  %v1427_v31 = vmul.f32 -1.442695, %v399_v29  ;;  %v391_v32 = vadd.f32 %v1413_v21, %v390_v30  ;;  %v407_v36 = vadd.f32 %v1413_v21, %v406_v33  ;;  %v1651_v21 = vld [vmem:[%s2252_s5 + $0xf0] sm:$0xff]   ;;  %v1657_v28 = vld [vmem:[%s2252_s5 + $0x60] sm:$0xff]   ;;  %v1663_v33 = vld [vmem:[%s2252_s5 + $0xd8] sm:$0xff]  }
  0xe0   : > { %v1431_v44 = vmul.f32 -1.442695, %v415_v40  ;;  %v1658_v30 = vld [vmem:[%s2252_s5 + $0x20] sm:$0xff]  }
  0xe1   : > { %v1425_v35 = vmul.f32 -1.442695, %v391_v32  ;;  %1679 = vpow2.f32 %v1427_v31  ;;  %v1429_v38 = vmul.f32 -1.442695, %v407_v36  ;;  %v1660_v31 = vld [vmem:[%s2252_s5 + $0xa0] sm:$0xff]  }
  0xe3   : > { %1681 = vpow2.f32 %v1425_v35  ;;  %v1664_v35 = vld [vmem:[%s2252_s5 + $0x98] sm:$0xff]  }
  0xe4   : > { %1683 = vpow2.f32 %v1426_v34  ;;  %v1662_v34 = vld [vmem:[%s2252_s5 + $0x18] sm:$0xff]  }
  0xe5   : > { %1685 = vpow2.f32 %v1429_v38  ;;  %v1666_v38 = vld [vmem:[%s2252_s5 + $0x10] sm:$0xff]  }
  0xe6   : > { %1687 = vpow2.f32 %v1428_v39  ;;  %v1668_v39 = vld [vmem:[%s2252_s5 + $0x90] sm:$0xff]  }
  0xec   : > { %v1678_v41 = vpop.eup %1677 }
  0xed   : > { %v442_v43 = vadd.f32 1.0, %v1678_v41  ;;  %v1671_v41 = vld [vmem:[%s2252_s5 + $0xc8] sm:$0xff]  }
  0xee   : > { %v1680_v45 = vpop.eup %1679 }
  0xef   : > { %1689 = vrcp.f32 %v442_v43  ;;  %v445_v50 = vadd.f32 1.0, %v1680_v45  ;;  %v1672_v43 = vld [vmem:[%s2252_s5 + $0x88] sm:$0xff]   ;;  %v1675_v45 = vld [vmem:[%s2252_s5 + $0xc0] sm:$0xff]  }
  0xf0   : > { %v1682_v46 = vpop.eup %1681  ;;  %1691 = vpow2.f32 %v1431_v44  ;;  %v1673_v44 = vld [vmem:[%s2252_s5 + $0x40] sm:$0xff]  }
  0xf1   : > { %v443_v48 = vadd.f32 1.0, %v1682_v46  ;;  %v1684_v49 = vpop.eup %1683  ;;  %v1674_v46 = vld [vmem:[%s2252_s5] sm:$0xff]  }
  0xf2   : > { %v444_v51 = vadd.f32 1.0, %v1684_v49  ;;  %v1686_v52 = vpop.eup %1685 }
  0xf3   : > { %1693 = vrcp.f32 %v443_v48  ;;  %v1688_v53 = vpop.eup %1687  ;;  %v447_v54 = vadd.f32 1.0, %v1686_v52  ;;  %v488_v48 = vlaneseq  ;;  %v486_v52 = vld [vmem:[%s2251_s4] sm:$0xf] }
  0xf4   : > { %1695 = vpow2.f32 %v1430_v47  ;;  %v446_v55 = vadd.f32 1.0, %v1688_v53  ;;  %v1676_v47 = vld [vmem:[%s2252_s5 + $0x80] sm:$0xff]  }
  0xf5   : > { %1697 = vrcp.f32 %v445_v50  ;;  %v489_v49 = vshrl.u32 %v488_v48, 7 }
  0xf6   : > { %1699 = vrcp.f32 %v444_v51 }
  0xf7   : > { %1701 = vrcp.f32 %v447_v54  ;;  %v490_v50 = vsub.s32 0, %v489_v49  ;;  %v498_v51 = vsub.s32 2, %v489_v49  ;;  %v494_v53 = vsub.s32 1, %v489_v49 }
  0xf8   : > { %1703 = vrcp.f32 %v446_v55  ;;  %v502_v54 = vsub.s32 3, %v489_v49 }
  0xf9   : > { %v2049_v55 = vrot.slane %v486_v52, %v490_v50 }
  0xfc   : > { %v1690_v56 = vpop.eup %1689 }
  0xfd   : > { %v1692_v57 = vpop.eup %1691  ;;  %v466_v59 = vmul.f32 %v1690_v56, %v388_v24  ;;  %v1653_v24 = vld [vmem:[%s2252_s5 + $0x68] sm:$0xff]   ;;  %v2051_v56 = vrot.slane %v486_v52, %v498_v51 }
  0xfe   : > { %v449_v62 = vadd.f32 1.0, %v1692_v57  ;;  %v2053_v57 = vrot.slane %v486_v52, %v494_v53 }
 0x100   : > { %v1694_v58 = vpop.eup %1693  ;;  %1705 = vrcp.f32 %v449_v62 }
 0x101   : > { %v467_v60 = vmul.f32 %v1694_v58, %v391_v32  ;;  %v1696_v61 = vpop.eup %1695  ;;  %v1661_v32 = vld [vmem:[%s2252_s5 + $0x58] sm:$0xff]   ;;  %v2055_v58 = vrot.slane %v486_v52, %v502_v54 }
 0x102   : > { %v1698_v0 = vpop.eup %1697  ;;  %v448_v1 = vadd.f32 1.0, %v1696_v61 }
 0x103   : > { %v474_v63 = vpack.c.bf16 %v467_v60, %v466_v59  ;;  %v1700_v2 = vpop.eup %1699  ;;  %v469_v3 = vmul.f32 %v1698_v0, %v399_v29  ;;  %v1659_v29 = vld [vmem:[%s2252_s5 + $0xe0] sm:$0xff]  }
 0x104   : > { %v468_v4 = vmul.f32 %v1700_v2, %v396_v27  ;;  %1707 = vrcp.f32 %v448_v1  ;;  %v1702_v6 = vpop.eup %1701  ;;  %v1656_v27 = vld [vmem:[%s2252_s5 + $0xa8] sm:$0xff]  }
 0x105   : > { %1440 = vmatmul.mubr.msk.bf16.vlgmr.msra.gmra.mxu1 %vm548_vm3, %v474_v63  ;;  %1444 = vmatmul.mubr.msk.bf16.vlgmr.msra.gmra.mxu0 %vm548_vm3, %v474_v63  ;;  %v1704_v7 = vpop.eup %1703  ;;  %v471_v8 = vmul.f32 %v1702_v6, %v407_v36  ;;  %v1665_v36 = vld [vmem:[%s2252_s5 + $0x50] sm:$0xff]  }
 0x106   : > { %603 = vmatprep.mubr.bf16.mxu1 %v1846_v18  ;;  %676 = vmatprep.mubr.bf16.mxu0 %v1846_v18  ;;  %v475_v5 = vpack.c.bf16 %v469_v3, %v468_v4  ;;  %v470_v9 = vmul.f32 %v1704_v7, %v404_v37  ;;  %v1667_v37 = vld [vmem:[%s2252_s5 + $0xd0] sm:$0xff]  }
 0x107   : > { %1522 = vmatpush3.bf16.msra.mxu1 %v1646_v19 }
 0x108   : > { %v476_v10 = vpack.c.bf16 %v471_v8, %v470_v9  ;;  %1523 = vmatprep.subr.bf16.mxu1 %v1649_v20 }
 0x10b   : > { %1524 = vmatpush3.bf16.msra.mxu1 %v1650_v22 }
 0x10c   : > { %1525 = vmatprep.subr.bf16.mxu1 %v1653_v24 }
 0x10d   : > { %1441 = vmatmul.mubr.msk.bf16.gmra.mxu1 %vm548_vm3, %v475_v5  ;;  %1445 = vmatmul.mubr.msk.bf16.gmra.mxu0 %vm548_vm3, %v475_v5  ;;  %v1706_v11 = vpop.eup %1705 }
 0x10e   : > { %613 = vmatprep.mubr.bf16.mxu1 %v1846_v18  ;;  %686 = vmatprep.mubr.bf16.mxu0 %v1846_v18  ;;  %v473_v13 = vmul.f32 %v1706_v11, %v415_v40  ;;  %v1669_v40 = vld [vmem:[%s2252_s5 + $0x48] sm:$0xff]  }
 0x10f   : > { %1526 = vmatpush3.bf16.msra.mxu1 %v1654_v26 }
 0x110   : > { %1527 = vmatprep.subr.bf16.mxu1 %v1657_v28 }
 0x111   : > { %v1708_v12 = vpop.eup %1707 }
 0x112   : > { %v472_v14 = vmul.f32 %v1708_v12, %v412_v42  ;;  %v1670_v42 = vld [vmem:[%s2252_s5 + $0x8] sm:$0xff]  }
 0x113   : > { %1528 = vmatpush3.bf16.msra.mxu1 %v1658_v30 }
 0x114   : > { %v477_v15 = vpack.c.bf16 %v473_v13, %v472_v14  ;;  %1529 = vmatprep.subr.bf16.mxu1 %v1661_v32 }
 0x115   : > { %1442 = vmatmul.mubr.msk.bf16.gmra.mxu1 %vm548_vm3, %v476_v10  ;;  %1446 = vmatmul.mubr.msk.bf16.gmra.mxu0 %vm548_vm3, %v476_v10 }
 0x116   : > { %623 = vmatprep.mubr.bf16.mxu1 %v1846_v18  ;;  %696 = vmatprep.mubr.bf16.mxu0 %v1846_v18  ;;  %v1648_v18 = vld [vmem:[%s2252_s5 + $0xb8] sm:$0xff]  }
 0x117   : > { %1562 = vmatpush3.bf16.msra.mxu0 %v1648_v18  ;;  %1530 = vmatpush3.bf16.msra.mxu1 %v1662_v34 }
 0x118   : > { %1563 = vmatprep.subr.bf16.mxu0 %v1651_v21  ;;  %1531 = vmatprep.subr.bf16.mxu1 %v1665_v36 }
 0x11b   : > { %1564 = vmatpush3.bf16.msra.mxu0 %v1652_v23  ;;  %1532 = vmatpush3.bf16.msra.mxu1 %v1666_v38 }
 0x11c   : > { %1565 = vmatprep.subr.bf16.mxu0 %v1655_v25  ;;  %1533 = vmatprep.subr.bf16.mxu1 %v1669_v40 }
 0x11d   : > { %1443 = vmatmul.mubr.msk.bf16.gmra.mxu1 %vm548_vm3, %v477_v15  ;;  %1447 = vmatmul.mubr.msk.bf16.gmra.mxu0 %vm548_vm3, %v477_v15 }
 0x11f   : > { %1566 = vmatpush3.bf16.msra.mxu0 %v1656_v27  ;;  %1534 = vmatpush3.bf16.msra.mxu1 %v1670_v42 }
 0x120   : > { %1567 = vmatprep.subr.bf16.mxu0 %v1659_v29  ;;  %1535 = vmatprep.subr.bf16.mxu1 %v1673_v44 }
 0x123   : > { %1568 = vmatpush3.bf16.msra.mxu0 %v1660_v31  ;;  %1536 = vmatpush3.bf16.msra.mxu1 %v1674_v46 }
 0x124   : > { %1569 = vmatprep.subr.bf16.mxu0 %v1663_v33 }
 0x127   : > { %1570 = vmatpush3.bf16.msra.mxu0 %v1664_v35 }
 0x128   : > { %1571 = vmatprep.subr.bf16.mxu0 %v1667_v37 }
 0x12b   : > { %1572 = vmatpush3.bf16.msra.mxu0 %v1668_v39 }
 0x12c   : > { %1573 = vmatprep.subr.bf16.mxu0 %v1671_v41 }
 0x12f   : > { %1574 = vmatpush3.bf16.msra.mxu0 %v1672_v43 }
 0x130   : > { %1575 = vmatprep.subr.bf16.mxu0 %v1675_v45 }
 0x133   : > { %1576 = vmatpush3.bf16.msra.mxu0 %v1676_v47 }
 0x1c5   : > { %v595_v59 = vpop.f32.mrf.mxu1  ;;  %v668_v60 = vpop.f32.mrf.mxu0 }
 0x1c6   : > { %v2058_v61 = vadd.f32 %v595_v59, %v2049_v55  ;;  %v2061_v62 = vadd.f32 %v668_v60, %v2051_v56 }
 0x1c7   : > { %v597_v63 = vpop.f32.mrf.mxu1  ;;  %v670_v0 = vpop.f32.mrf.mxu0 }
 0x1c8   : > { %v1448_v1 = vmul.f32 -1.442695, %v2058_v61  ;;  %v1450_v2 = vmul.f32 -1.442695, %v2061_v62  ;;  %v2066_v3 = vadd.f32 %v597_v63, %v2053_v57  ;;  %v2069_v4 = vadd.f32 %v670_v0, %v2055_v58 }
 0x1c9   : > { %v599_v5 = vpop.f32.mrf.mxu1  ;;  %v672_v6 = vpop.f32.mrf.mxu0 }
 0x1ca   : > { %1709 = vpow2.f32 %v1448_v1  ;;  %v1449_v7 = vmul.f32 -1.442695, %v2066_v3  ;;  %v1451_v8 = vmul.f32 -1.442695, %v2069_v4  ;;  %v2074_v9 = vadd.f32 %v599_v5, %v2049_v55 }
 0x1cb   : > { %1711 = vpow2.f32 %v1450_v2  ;;  %v2077_v10 = vadd.f32 %v672_v6, %v2051_v56  ;;  %v601_v11 = vpop.f32.mrf.mxu1  ;;  %v674_v12 = vpop.f32.mrf.mxu0 }
 0x1cc   : > { %1713 = vpow2.f32 %v1449_v7  ;;  %v1452_v13 = vmul.f32 -1.442695, %v2074_v9  ;;  %v2081_v14 = vadd.f32 %v601_v11, %v2053_v57  ;;  %v2084_v15 = vadd.f32 %v674_v12, %v2055_v58 }
 0x1cd   : > { %1715 = vpow2.f32 %v1451_v8  ;;  %v1454_v16 = vmul.f32 -1.442695, %v2077_v10  ;;  %v605_v17 = vpop.f32.mrf.mxu1  ;;  %v678_v19 = vpop.f32.mrf.mxu0 }
 0x1ce   : > { %1717 = vpow2.f32 %v1452_v13  ;;  %v1453_v18 = vmul.f32 -1.442695, %v2081_v14  ;;  %v1455_v20 = vmul.f32 -1.442695, %v2084_v15  ;;  %v2090_v21 = vadd.f32 %v605_v17, %v2049_v55 }
 0x1cf   : > { %1719 = vpow2.f32 %v1454_v16  ;;  %v2093_v22 = vadd.f32 %v678_v19, %v2051_v56  ;;  %v607_v23 = vpop.f32.mrf.mxu1  ;;  %v680_v24 = vpop.f32.mrf.mxu0 }
 0x1d0   : > { %1721 = vpow2.f32 %v1453_v18  ;;  %v1456_v25 = vmul.f32 -1.442695, %v2090_v21  ;;  %v2097_v26 = vadd.f32 %v607_v23, %v2053_v57  ;;  %v2100_v27 = vadd.f32 %v680_v24, %v2055_v58 }
 0x1d1   : > { %1723 = vpow2.f32 %v1455_v20  ;;  %v1458_v28 = vmul.f32 -1.442695, %v2093_v22  ;;  %v609_v29 = vpop.f32.mrf.mxu1  ;;  %v682_v30 = vpop.f32.mrf.mxu0 }
 0x1d2   : > { %1725 = vpow2.f32 %v1456_v25  ;;  %v1457_v31 = vmul.f32 -1.442695, %v2097_v26  ;;  %v1459_v32 = vmul.f32 -1.442695, %v2100_v27  ;;  %v2106_v33 = vadd.f32 %v609_v29, %v2049_v55 }
 0x1d3   : > { %1727 = vpow2.f32 %v1458_v28  ;;  %v2109_v34 = vadd.f32 %v682_v30, %v2051_v56  ;;  %v611_v35 = vpop.f32.mrf.mxu1  ;;  %v684_v36 = vpop.f32.mrf.mxu0 }
 0x1d4   : > { %1729 = vpow2.f32 %v1457_v31  ;;  %v1460_v37 = vmul.f32 -1.442695, %v2106_v33  ;;  %v2113_v38 = vadd.f32 %v611_v35, %v2053_v57  ;;  %v2116_v39 = vadd.f32 %v684_v36, %v2055_v58 }
 0x1d5   : > { %1731 = vpow2.f32 %v1459_v32  ;;  %v1462_v40 = vmul.f32 -1.442695, %v2109_v34  ;;  %v615_v41 = vpop.f32.mrf.mxu1  ;;  %v688_v42 = vpop.f32.mrf.mxu0 }
 0x1d6   : > { %1733 = vpow2.f32 %v1460_v37  ;;  %v1461_v43 = vmul.f32 -1.442695, %v2113_v38  ;;  %v1463_v44 = vmul.f32 -1.442695, %v2116_v39  ;;  %v2122_v16 = vadd.f32 %v615_v41, %v2049_v55 }
 0x1d7   : > { %v1710_v45 = vpop.eup %1709  ;;  %1735 = vpow2.f32 %v1462_v40  ;;  %v617_v46 = vpop.f32.mrf.mxu1  ;;  %v2125_v18 = vadd.f32 %v688_v42, %v2051_v56 }
 0x1d8   : > { %v690_v47 = vpop.f32.mrf.mxu0  ;;  %v1712_v48 = vpop.eup %1711  ;;  %v803_v49 = vadd.f32 1.0, %v1710_v45  ;;  %1737 = vpow2.f32 %v1461_v43  ;;  %v1464_v32 = vmul.f32 -1.442695, %v2122_v16  ;;  %v2130_v40 = vadd.f32 %v617_v46, %v2053_v57 }
 0x1d9   : > { %v1714_v50 = vpop.eup %1713  ;;  %v805_v51 = vadd.f32 1.0, %v1712_v48  ;;  %1739 = vpow2.f32 %v1463_v44  ;;  %v619_v52 = vpop.f32.mrf.mxu1  ;;  %v1466_v37 = vmul.f32 -1.442695, %v2125_v18  ;;  %v2133_v43 = vadd.f32 %v690_v47, %v2055_v58 }
 0x1da   : > { %v1716_v53 = vpop.eup %1715  ;;  %1741 = vrcp.f32 %v803_v49  ;;  %v804_v54 = vadd.f32 1.0, %v1714_v50  ;;  %v692_v59 = vpop.f32.mrf.mxu0  ;;  %v2136_v44 = vadd.f32 %v619_v52, %v2049_v55 }
 0x1db   : > { %v1718_v60 = vpop.eup %1717  ;;  %1743 = vrcp.f32 %v805_v51  ;;  %v806_v63 = vadd.f32 1.0, %v1716_v53  ;;  %v621_v6 = vpop.f32.mrf.mxu1  ;;  %v2139_v50 = vadd.f32 %v692_v59, %v2051_v56 }
 0x1dc   : > { %v1720_v0 = vpop.eup %1719  ;;  %1745 = vrcp.f32 %v804_v54  ;;  %v807_v1 = vadd.f32 1.0, %v1718_v60  ;;  %v694_v11 = vpop.f32.mrf.mxu0  ;;  %v2142_v51 = vadd.f32 %v621_v6, %v2053_v57 }
 0x1dd   : > { %v1722_v2 = vpop.eup %1721  ;;  %1747 = vrcp.f32 %v806_v63  ;;  %v809_v5 = vadd.f32 1.0, %v1720_v0  ;;  %v625_v24 = vpop.f32.mrf.mxu1  ;;  %v2145_v47 = vadd.f32 %v694_v11, %v2055_v58  ;;  %v1465_v63 = vmul.f32 -1.442695, %v2130_v40 }
 0x1de   : > { %v1724_v7 = vpop.eup %1723  ;;  %1749 = vrcp.f32 %v807_v1  ;;  %v808_v8 = vadd.f32 1.0, %v1722_v2  ;;  %v698_v29 = vpop.f32.mrf.mxu0  ;;  %v2148_v52 = vadd.f32 %v625_v24, %v2049_v55  ;;  %v1467_v2 = vmul.f32 -1.442695, %v2133_v43 }
 0x1df   : > { %v1726_v12 = vpop.eup %1725  ;;  %1751 = vrcp.f32 %v809_v5  ;;  %v810_v13 = vadd.f32 1.0, %v1724_v7  ;;  %v627_v45 = vpop.f32.mrf.mxu1  ;;  %v2152_v59 = vadd.f32 %v698_v29, %v2051_v56  ;;  %v1470_v11 = vmul.f32 -1.442695, %v2139_v50 }
 0x1e0   : > { %v1728_v17 = vpop.eup %1727  ;;  %1753 = vrcp.f32 %v808_v8  ;;  %v811_v19 = vadd.f32 1.0, %v1726_v12  ;;  %v700_v46 = vpop.f32.mrf.mxu0  ;;  %v2155_v0 = vadd.f32 %v627_v45, %v2053_v57  ;;  %v1468_v8 = vmul.f32 -1.442695, %v2136_v44 }
 0x1e1   : > { %v1730_v20 = vpop.eup %1729  ;;  %1755 = vrcp.f32 %v810_v13  ;;  %v813_v23 = vadd.f32 1.0, %v1728_v17  ;;  %v2159_v5 = vadd.f32 %v700_v46, %v2055_v58  ;;  %v629_v6 = vpop.f32.mrf.mxu1  ;;  %v1469_v17 = vmul.f32 -1.442695, %v2142_v51 }
 0x1e2   : > { %v1732_v25 = vpop.eup %1731  ;;  %1757 = vrcp.f32 %v811_v19  ;;  %v812_v28 = vadd.f32 1.0, %v1730_v20  ;;  %v702_v12 = vpop.f32.mrf.mxu0  ;;  %v1471_v19 = vmul.f32 -1.442695, %v2145_v47  ;;  %v1472_v20 = vmul.f32 -1.442695, %v2148_v52 }
 0x1e3   : > { %v1734_v30 = vpop.eup %1733  ;;  %1759 = vrcp.f32 %v813_v23  ;;  %v814_v31 = vadd.f32 1.0, %v1732_v25  ;;  %v1474_v24 = vmul.f32 -1.442695, %v2152_v59  ;;  %v1473_v25 = vmul.f32 -1.442695, %v2155_v0 }
 0x1e4   : > { %v1736_v35 = vpop.eup %1735  ;;  %1761 = vrcp.f32 %v812_v28  ;;  %v815_v36 = vadd.f32 1.0, %v1734_v30  ;;  %v2169_v28 = vadd.f32 %v629_v6, %v2049_v55  ;;  %v704_v55 = vpop.f32.mrf.mxu0 }
 0x1e5   : > { %v1738_v41 = vpop.eup %1737  ;;  %1763 = vrcp.f32 %v814_v31  ;;  %v817_v42 = vadd.f32 1.0, %v1736_v35  ;;  %v1475_v31 = vmul.f32 -1.442695, %v2159_v5  ;;  %v631_v35 = vpop.f32.mrf.mxu1 }
 0x1e6   : > { %v1740_v48 = vpop.eup %1739  ;;  %1765 = vrcp.f32 %v815_v36  ;;  %v816_v49 = vadd.f32 1.0, %v1738_v41 }
 0x1e7   : > { %v1742_v53 = vpop.eup %1741  ;;  %1767 = vrcp.f32 %v817_v42  ;;  %v818_v54 = vadd.f32 1.0, %v1740_v48 }
 0x1e8   : > { %v1744_v60 = vpop.eup %1743  ;;  %1769 = vrcp.f32 %v816_v49  ;;  %v899_v48 = vmul.f32 %v1742_v53, %v2058_v61 }
 0x1e9   : > { %v1746_v1 = vpop.eup %1745  ;;  %1771 = vrcp.f32 %v818_v54  ;;  %v901_v46 = vmul.f32 %v1744_v60, %v2061_v62 }
 0x1ea   : > { %v1748_v7 = vpop.eup %1747  ;;  %1773 = vpow2.f32 %v1464_v32  ;;  %v2174_v32 = vadd.f32 %v702_v12, %v2051_v56 }
 0x1eb   : > { %v1750_v13 = vpop.eup %1749  ;;  %1775 = vpow2.f32 %v1466_v37  ;;  %v900_v37 = vmul.f32 %v1746_v1, %v2066_v3  ;;  %v2184_v3 = vadd.f32 %v631_v35, %v2053_v57 }
 0x1ec   : > { %v1752_v23 = vpop.eup %1751  ;;  %1777 = vpow2.f32 %v1465_v63  ;;  %v903_v30 = vmul.f32 %v1750_v13, %v2074_v9  ;;  %v902_v9 = vmul.f32 %v1748_v7, %v2069_v4  ;;  %v2187_v63 = vadd.f32 %v704_v55, %v2055_v58 }
 0x1ed   : > { %v1754_v29 = vpop.eup %1753  ;;  %1779 = vpow2.f32 %v1467_v2  ;;  %v905_v41 = vmul.f32 %v1752_v23, %v2077_v10  ;;  %v1478_v62 = vmul.f32 -1.442695, %v2174_v32  ;;  %v1477_v60 = vmul.f32 -1.442695, %v2184_v3 }
 0x1ee   : > { %v1756_v36 = vpop.eup %1755  ;;  %v904_v42 = vmul.f32 %v1754_v29, %v2081_v14  ;;  %1781 = vpow2.f32 %v1468_v8  ;;  %v931_v14 = vpack.c.bf16 %v903_v30, %v899_v48  ;;  %v1479_v6 = vmul.f32 -1.442695, %v2187_v63 }
 0x1ef   : > { %v1758_v45 = vpop.eup %1757  ;;  %v906_v49 = vmul.f32 %v1756_v36, %v2084_v15  ;;  %1783 = vpow2.f32 %v1470_v11  ;;  %v933_v4 = vpack.c.bf16 %v905_v41, %v901_v46  ;;  %v1476_v15 = vmul.f32 -1.442695, %v2169_v28 }
 0x1f0   : > { %v1760_v56 = vpop.eup %1759  ;;  %1785 = vpow2.f32 %v1469_v17  ;;  %v932_v10 = vpack.c.bf16 %v904_v42, %v900_v37  ;;  %v907_v17 = vmul.f32 %v1758_v45, %v2090_v21 }
 0x1f1   : > { %v1762_v54 = vpop.eup %1761  ;;  %1787 = vpow2.f32 %v1471_v19  ;;  %v934_v61 = vpack.c.bf16 %v906_v49, %v902_v9  ;;  %v909_v23 = vmul.f32 %v1760_v56, %v2093_v22 }
 0x1f2   : > { %v1764_v53 = vpop.eup %1763  ;;  %1789 = vpow2.f32 %v1472_v20  ;;  %1242 = vmatprep.mubr.bf16.mxu1 %v932_v10  ;;  %v908_v8 = vmul.f32 %v1762_v54, %v2097_v26 }
 0x1f3   : > { %v1766_v1 = vpop.eup %1765  ;;  %1791 = vpow2.f32 %v1474_v24  ;;  %1307 = vmatprep.mubr.bf16.mxu0 %v934_v61  ;;  %1243 = vmatmul.mubr.bf16.vlgmr.msra.gmra.mxu1 %v931_v14  ;;  %v910_v19 = vmul.f32 %v1764_v53, %v2100_v27 }
 0x1f4   : > { %v1768_v57 = vpop.eup %1767  ;;  %1793 = vpow2.f32 %v1473_v25  ;;  %1308 = vmatmul.mubr.bf16.vlgmr.msra.gmra.mxu0 %v933_v4  ;;  %v911_v2 = vmul.f32 %v1766_v1, %v2106_v33 }
 0x1f5   : > { %v1770_v58 = vpop.eup %1769  ;;  %1795 = vpow2.f32 %v1475_v31  ;;  %v913_v11 = vmul.f32 %v1768_v57, %v2109_v34 }
 0x1f6   : > { %v1772_v7 = vpop.eup %1771  ;;  %v912_v12 = vmul.f32 %v1770_v58, %v2113_v38  ;;  %1797 = vpow2.f32 %v1476_v15  ;;  %v935_v38 = vpack.c.bf16 %v911_v2, %v907_v17 }
 0x1f7   : > { %v1774_v13 = vpop.eup %1773  ;;  %v914_v20 = vmul.f32 %v1772_v7, %v2116_v39  ;;  %1799 = vpow2.f32 %v1478_v62  ;;  %v937_v21 = vpack.c.bf16 %v913_v11, %v909_v23 }
 0x1f8   : > { %v1776_v33 = vpop.eup %1775  ;;  %v819_v24 = vadd.f32 1.0, %v1774_v13  ;;  %1801 = vpow2.f32 %v1477_v60  ;;  %v936_v25 = vpack.c.bf16 %v912_v12, %v908_v8 }
 0x1f9   : > { %v1778_v26 = vpop.eup %1777  ;;  %v821_v29 = vadd.f32 1.0, %v1776_v33  ;;  %1803 = vpow2.f32 %v1479_v6  ;;  %v938_v34 = vpack.c.bf16 %v914_v20, %v910_v19 }
 0x1fa   : > { %v1780_v30 = vpop.eup %1779  ;;  %1805 = vrcp.f32 %v819_v24  ;;  %v820_v31 = vadd.f32 1.0, %v1778_v26  ;;  %1250 = vmatprep.mubr.bf16.mxu1 %v936_v25 }
 0x1fb   : > { %v1782_v27 = vpop.eup %1781  ;;  %1807 = vrcp.f32 %v821_v29  ;;  %v822_v39 = vadd.f32 1.0, %v1780_v30  ;;  %1315 = vmatprep.mubr.bf16.mxu0 %v938_v34  ;;  %1251 = vmatmul.mubr.bf16.gmra.mxu1 %v935_v38 }
 0x1fc   : > { %v1784_v35 = vpop.eup %1783  ;;  %1809 = vrcp.f32 %v820_v31  ;;  %v823_v22 = vadd.f32 1.0, %v1782_v27  ;;  %1316 = vmatmul.mubr.bf16.gmra.mxu0 %v937_v21 }
 0x1fd   : > { %v1786_v36 = vpop.eup %1785  ;;  %1811 = vrcp.f32 %v822_v39  ;;  %v825_v37 = vadd.f32 1.0, %v1784_v35 }
 0x1fe   : > { %v1788_v41 = vpop.eup %1787  ;;  %1813 = vrcp.f32 %v823_v22  ;;  %v824_v42 = vadd.f32 1.0, %v1786_v36 }
 0x1ff   : > { %v1790_v55 = vpop.eup %1789  ;;  %1815 = vrcp.f32 %v825_v37  ;;  %v826_v45 = vadd.f32 1.0, %v1788_v41 }
 0x200   : > { %v1792_v48 = vpop.eup %1791  ;;  %1817 = vrcp.f32 %v824_v42  ;;  %v827_v9 = vadd.f32 1.0, %v1790_v55 }
 0x201   : > { %v1794_v49 = vpop.eup %1793  ;;  %1819 = vrcp.f32 %v826_v45  ;;  %v829_v56 = vadd.f32 1.0, %v1792_v48 }
 0x202   : > { %v1796_v46 = vpop.eup %1795  ;;  %1821 = vrcp.f32 %v827_v9  ;;  %v828_v10 = vadd.f32 1.0, %v1794_v49 }
 0x203   : > { %v1798_v54 = vpop.eup %1797  ;;  %1823 = vrcp.f32 %v829_v56  ;;  %v830_v14 = vadd.f32 1.0, %v1796_v46 }
 0x204   : > { %v1800_v61 = vpop.eup %1799  ;;  %1825 = vrcp.f32 %v828_v10  ;;  %v831_v53 = vadd.f32 1.0, %v1798_v54 }
 0x205   : > { %v1802_v4 = vpop.eup %1801  ;;  %1827 = vrcp.f32 %v830_v14  ;;  %v833_v15 = vadd.f32 1.0, %v1800_v61 }
 0x206   : > { %v1804_v1 = vpop.eup %1803  ;;  %1829 = vrcp.f32 %v831_v53  ;;  %v832_v62 = vadd.f32 1.0, %v1802_v4 }
 0x207   : > { %v1806_v57 = vpop.eup %1805  ;;  %1831 = vrcp.f32 %v833_v15  ;;  %v834_v60 = vadd.f32 1.0, %v1804_v1 }
 0x208   : > { %v1808_v58 = vpop.eup %1807  ;;  %1833 = vrcp.f32 %v832_v62  ;;  %v915_v23 = vmul.f32 %v1806_v57, %v2122_v16 }
 0x209   : > { %v1810_v2 = vpop.eup %1809  ;;  %1835 = vrcp.f32 %v834_v60  ;;  %v917_v29 = vmul.f32 %v1808_v58, %v2125_v18 }
 0x20a   : > { %v1812_v6 = vpop.eup %1811  ;;  %v916_v17 = vmul.f32 %v1810_v2, %v2130_v40 }
 0x20b   : > { %v1814_v7 = vpop.eup %1813  ;;  %v918_v24 = vmul.f32 %v1812_v6, %v2133_v43 }
 0x20c   : > { %v1816_v8 = vpop.eup %1815  ;;  %v919_v12 = vmul.f32 %v1814_v7, %v2136_v44 }
 0x20d   : > { %v1818_v11 = vpop.eup %1817  ;;  %v921_v19 = vmul.f32 %v1816_v8, %v2139_v50 }
 0x20e   : > { %v1820_v13 = vpop.eup %1819  ;;  %v920_v20 = vmul.f32 %v1818_v11, %v2142_v51  ;;  %v939_v30 = vpack.c.bf16 %v919_v12, %v915_v23 }
 0x20f   : > { %v1822_v33 = vpop.eup %1821  ;;  %v922_v25 = vmul.f32 %v1820_v13, %v2145_v47  ;;  %v941_v40 = vpack.c.bf16 %v921_v19, %v917_v29 }
 0x210   : > { %v1824_v26 = vpop.eup %1823  ;;  %v940_v34 = vpack.c.bf16 %v920_v20, %v916_v17  ;;  %v923_v39 = vmul.f32 %v1822_v33, %v2148_v52  ;;  %v2220_v52 = vld [vmem:[%s2253_s6] ss:$0 sm:$0xff] }
 0x211   : > { %v1826_v38 = vpop.eup %1825  ;;  %v942_v44 = vpack.c.bf16 %v922_v25, %v918_v24  ;;  %v925_v36 = vmul.f32 %v1824_v26, %v2152_v59 }
 0x212   : > { %v1828_v31 = vpop.eup %1827  ;;  %1258 = vmatprep.mubr.bf16.mxu1 %v940_v34  ;;  %v924_v47 = vmul.f32 %v1826_v38, %v2155_v0 }
 0x213   : > { %v1830_v50 = vpop.eup %1829  ;;  %1323 = vmatprep.mubr.bf16.mxu0 %v942_v44  ;;  %1259 = vmatmul.mubr.bf16.gmra.mxu1 %v939_v30  ;;  %v926_v35 = vmul.f32 %v1828_v31, %v2159_v5 }
 0x214   : > { %v1832_v51 = vpop.eup %1831  ;;  %1324 = vmatmul.mubr.bf16.gmra.mxu0 %v941_v40  ;;  %v927_v43 = vmul.f32 %v1830_v50, %v2169_v28 }
 0x215   : > { %v1834_v16 = vpop.eup %1833  ;;  %v929_v18 = vmul.f32 %v1832_v51, %v2174_v32 }
 0x216   : > { %v1836_v21 = vpop.eup %1835  ;;  %v928_v27 = vmul.f32 %v1834_v16, %v2184_v3  ;;  %v943_v42 = vpack.c.bf16 %v927_v43, %v923_v39 }
 0x217   : > { %v930_v22 = vmul.f32 %v1836_v21, %v2187_v63  ;;  %v945_v28 = vpack.c.bf16 %v929_v18, %v925_v36 }
 0x218   : > { %v944_v37 = vpack.c.bf16 %v928_v27, %v924_v47 }
 0x219   : > { %v946_v41 = vpack.c.bf16 %v930_v22, %v926_v35 }
 0x21a   : > { %1266 = vmatprep.mubr.bf16.mxu1 %v944_v37 }
 0x21b   : > { %1331 = vmatprep.mubr.bf16.mxu0 %v946_v41  ;;  %1267 = vmatmul.mubr.bf16.gmra.mxu1 %v943_v42 }
 0x21c   : > { %1332 = vmatmul.mubr.bf16.gmra.mxu0 %v945_v28 }
 0x2b3   : > { %v1537_v0 = vpop.f32.mrf.mxu1 }
 0x2b4   : > { %v1577_v32 = vpop.f32.mrf.mxu0 }
 0x2b5   : > { %v1538_v5 = vpop.f32.mrf.mxu1 }
 0x2b6   : > { %v1539_v3 = vadd.f32 %v1538_v5, %v1537_v0  ;;  %v1578_v63 = vpop.f32.mrf.mxu0 }
 0x2b7   : > { %v1540_v59 = vpop.f32.mrf.mxu1  ;;  %v1579_v45 = vadd.f32 %v1578_v63, %v1577_v32 }
 0x2b8   : > { %v1245_v55 = vadd.f32 %v1539_v3, %v2220_v52  ;;  %v1580_v48 = vpop.f32.mrf.mxu0 }
 0x2b9   : > { %v1541_v9 = vpop.f32.mrf.mxu1 }
 0x2ba   : > { %v1310_v49 = vadd.f32 %v1579_v45, %v1245_v55  ;;  %v1542_v56 = vadd.f32 %v1541_v9, %v1540_v59  ;;  %v1581_v46 = vpop.f32.mrf.mxu0 }
 0x2bb   : > { %v1543_v10 = vpop.f32.mrf.mxu1  ;;  %v1582_v14 = vadd.f32 %v1581_v46, %v1580_v48 }
 0x2bc   : > { %1340 = vst [vmem:[%s2227_s17] sm:$0xff] %v1310_v49  ;;  %v1248_v54 = vadd.f32 %v1542_v56, %v2220_v52  ;;  %v1583_v61 = vpop.f32.mrf.mxu0 }
 0x2bd   : > { %v1544_v53 = vpop.f32.mrf.mxu1 }
 0x2be   : > { %v1313_v4 = vadd.f32 %v1582_v14, %v1248_v54  ;;  %v1545_v15 = vadd.f32 %v1544_v53, %v1543_v10  ;;  %v1584_v1 = vpop.f32.mrf.mxu0 }
 0x2bf   : > { %v1546_v62 = vpop.f32.mrf.mxu1  ;;  %v1585_v60 = vadd.f32 %v1584_v1, %v1583_v61 }
 0x2c0   : > { %1341 = vst [vmem:[%s2227_s17 + $0x8] sm:$0xff] %v1313_v4  ;;  %v1253_v57 = vadd.f32 %v1545_v15, %v2220_v52  ;;  %v1586_v58 = vpop.f32.mrf.mxu0 }
 0x2c1   : > { %v1547_v2 = vpop.f32.mrf.mxu1 }
 0x2c2   : > { %v1318_v6 = vadd.f32 %v1585_v60, %v1253_v57  ;;  %v1548_v7 = vadd.f32 %v1547_v2, %v1546_v62  ;;  %v1587_v8 = vpop.f32.mrf.mxu0 }
 0x2c3   : > { %v1588_v12 = vadd.f32 %v1587_v8, %v1586_v58 }
 0x2c4   : > { %1342 = vst [vmem:[%s2227_s17 + $0x10] sm:$0xff] %v1318_v6  ;;  %v1256_v11 = vadd.f32 %v1548_v7, %v2220_v52 }
 0x2c6   : > { %v1321_v13 = vadd.f32 %v1588_v12, %v1256_v11 }
 0x2c8   : > { %1343 = vst [vmem:[%s2227_s17 + $0x18] sm:$0xff] %v1321_v13 }
 0x2d3   : > { %v1549_v17 = vpop.f32.mrf.mxu1 }
 0x2d4   : > { %v1589_v19 = vpop.f32.mrf.mxu0 }
 0x2d5   : > { %v1550_v20 = vpop.f32.mrf.mxu1 }
 0x2d6   : > { %v1551_v33 = vadd.f32 %v1550_v20, %v1549_v17  ;;  %v1590_v23 = vpop.f32.mrf.mxu0 }
 0x2d7   : > { %v1552_v24 = vpop.f32.mrf.mxu1  ;;  %v1591_v26 = vadd.f32 %v1590_v23, %v1589_v19 }
 0x2d8   : > { %v1261_v25 = vadd.f32 %v1551_v33, %v2220_v52  ;;  %v1592_v29 = vpop.f32.mrf.mxu0 }
 0x2d9   : > { %v1553_v34 = vpop.f32.mrf.mxu1 }
 0x2da   : > { %v1326_v38 = vadd.f32 %v1591_v26, %v1261_v25  ;;  %v1554_v44 = vadd.f32 %v1553_v34, %v1552_v24  ;;  %v1593_v30 = vpop.f32.mrf.mxu0 }
 0x2db   : > { %v1555_v31 = vpop.f32.mrf.mxu1  ;;  %v1594_v50 = vadd.f32 %v1593_v30, %v1592_v29 }
 0x2dc   : > { %1344 = vst [vmem:[%s2227_s17 + $0x20] sm:$0xff] %v1326_v38  ;;  %v1264_v40 = vadd.f32 %v1554_v44, %v2220_v52  ;;  %v1595_v51 = vpop.f32.mrf.mxu0 }
 0x2dd   : > { %v1556_v16 = vpop.f32.mrf.mxu1 }
 0x2de   : > { %v1329_v43 = vadd.f32 %v1594_v50, %v1264_v40  ;;  %v1557_v21 = vadd.f32 %v1556_v16, %v1555_v31  ;;  %v1596_v47 = vpop.f32.mrf.mxu0 }
 0x2df   : > { %v1558_v18 = vpop.f32.mrf.mxu1  ;;  %v1597_v39 = vadd.f32 %v1596_v47, %v1595_v51 }
 0x2e0   : > { %1345 = vst [vmem:[%s2227_s17 + $0x28] sm:$0xff] %v1329_v43  ;;  %v1269_v27 = vadd.f32 %v1557_v21, %v2220_v52  ;;  %v1598_v35 = vpop.f32.mrf.mxu0 }
 0x2e1   : > { %v1559_v22 = vpop.f32.mrf.mxu1 }
 0x2e2   : > { %v1334_v36 = vadd.f32 %v1597_v39, %v1269_v27  ;;  %v1560_v37 = vadd.f32 %v1559_v22, %v1558_v18  ;;  %v1599_v41 = vpop.f32.mrf.mxu0 }
 0x2e3   : > { %v1600_v28 = vadd.f32 %v1599_v41, %v1598_v35 }
 0x2e4   : > { %1346 = vst [vmem:[%s2227_s17 + $0x30] sm:$0xff] %v1334_v36  ;;  %v1272_v42 = vadd.f32 %v1560_v37, %v2220_v52 }
 0x2e6   : > { %v1337_v0 = vadd.f32 %v1600_v28, %v1272_v42 }
 0x2e8   : > { %1347 = vst [vmem:[%s2227_s17 + $0x38] sm:$0xff] %v1337_v0 }
 0x2e9 PF: > { %s17_s24 = sadd.s32 1, %s1843_s24  }
 0x2ea   : > { %p14_p4 = scmp.ge.s32.totalorder %s17_s24, 4  }
 0x2ec   :  { %16 = sbr.rel (!%p14_p4) target bundleno = 1 (0x1), region = 78 }

</bundles_post_ra>
